<compile_context>
chip_gen: v7x
topology: tpu7x:2x2x1
jax: 0.10.0
libtpu: 0.0.40
codegen_flags: <defaults>
</compile_context>

<pallas_src>
import functools

import jax
import jax.numpy as jnp
from jax.experimental import pallas as pl
from jax.experimental.pallas import tpu as pltpu


# input -> intermediates [4, 4, 2]; output size (len(legal_actions)) appended at call time.
_HIDDEN_DIMS = (4, 4, 4, 2)


def _make_mlp_kernel(dims):
    """Build the fused MLP(+argmax) kernel for the given static layer sizes."""
    n_layers = len(dims) - 1

    def kernel(wb_ref, x_ref, q_ref, idx_ref):
        # Activations: one [SUB_R, 128] slab per feature (full (8,128) vregs,
        # batch on the sublane x lane axes).
        h = [x_ref[k] for k in range(dims[0])]

        off = 0
        for li in range(n_layers):
            fin, fout = dims[li], dims[li + 1]
            w_off, b_off = off, off + fin * fout
            new_h = []
            for j in range(fout):
                # Unrolled scalar-broadcast FMAs on the VPU; no MXU involvement.
                acc = wb_ref[w_off + j] * h[0]
                for k in range(1, fin):
                    acc = acc + wb_ref[w_off + k * fout + j] * h[k]
                acc = acc + wb_ref[b_off + j]            # bias (scalar broadcast)
                if li < n_layers - 1:
                    acc = jnp.maximum(acc, 0.0)          # ReLU on hidden layers only
                new_h.append(acc)
            h = new_h
            off = b_off + fout

        # Direct per-action full-vreg stores (no concatenate -> no relayout copy).
        for j in range(dims[-1]):
            q_ref[j] = h[j]

        # Fused greedy-action epilogue (argmax over actions) as pure VPU selects.
        # Strict '>' keeps the first occurrence on ties, matching jnp.argmax.
        best = h[0]
        idx = jnp.zeros(best.shape, dtype=jnp.int32)
        for j in range(1, dims[-1]):
            better = h[j] > best
            best = jnp.where(better, h[j], best)
            idx = jnp.where(better, jnp.int32(j), idx)
        idx_ref[...] = idx

    return kernel


def pack_params(params):
    """Flatten [(W [in,out], b [1,out]), ...] into one f32 vector + static dims.

    Call once per parameter update and reuse the result; the concat is a separate
    XLA op that should not sit on the per-inference hot path.
    """
    dims = tuple([params[0][0].shape[0]] + [W.shape[1] for W, _ in params])
    chunks = []
    for W, b in params:
        chunks.append(W.reshape(-1))
        chunks.append(b.reshape(-1))
    return jnp.concatenate(chunks).astype(jnp.float32), dims


def _pick_sub_r(batch, max_sub_r=32):
    """Sublane rows per grid step: up to 32 (=4096 batch elems), min one (8,128) slab."""
    rows = -(-batch // 128)            # 128-lane rows needed
    rows = ((rows + 7) // 8) * 8       # round up to full (8,128) slabs
    return max(8, min(max_sub_r, rows))


@functools.partial(jax.jit, static_argnames=("dims", "sub_r"))
def _fused_mlp(wb, x, *, dims, sub_r):
    """Fused MLP + argmax. x: [B, dims[0]] f32. Returns (q [B, A], idx [B])."""
    B, in_f = x.shape
    assert in_f == dims[0], "SimpleQNetwork expects 4-dim observations"
    n_actions = dims[-1]

    tile_b = sub_r * 128
    n_tiles = -(-B // tile_b)
    b_pad = n_tiles * tile_b
    rows = b_pad // 128

    # Feature-major slab layout [F, rows, 128]; batch index b -> (b // 128, b % 128).
    xT = jnp.zeros((in_f, b_pad), jnp.float32).at[:, :B].set(x.T.astype(jnp.float32))
    xT = xT.reshape(in_f, rows, 128)

    qT, idxT = pl.pallas_call(
        _make_mlp_kernel(dims),
        out_shape=(
            jax.ShapeDtypeStruct((n_actions, rows, 128), jnp.float32),
            jax.ShapeDtypeStruct((rows, 128), jnp.int32),
        ),
        grid=(n_tiles,),
        in_specs=[
            # Packed weights + biases: whole ~KB vector resident in SMEM for the
            # entire grid (constant block -> copied in once), scalar-indexed in-kernel.
            pl.BlockSpec(memory_space=pltpu.MemorySpace.SMEM),
            # Activations: batch slab tiled along the sublane-row axis.
            pl.BlockSpec((in_f, sub_r, 128), lambda i: (0, i, 0)),
        ],
        out_specs=(
            pl.BlockSpec((n_actions, sub_r, 128), lambda i: (0, i, 0)),
            pl.BlockSpec((sub_r, 128), lambda i: (i, 0)),
        ),
        compiler_params=pltpu.CompilerParams(dimension_semantics=("parallel",)),
    )(wb, xT)

    q = qT.reshape(n_actions, b_pad)[:, :B].T
    idx = idxT.reshape(b_pad)[:B]
    return q, idx


def simple_q_network_forward(x, params, *, max_sub_r=32):
    """Forward pass matching SimpleQNetwork.forward: Q-values [B, n_actions]."""
    wb, dims = pack_params(params)
    q, _ = _fused_mlp(wb, x, dims=dims, sub_r=_pick_sub_r(x.shape[0], max_sub_r))
    return q


def simple_q_network_batch_act(x, params, *, max_sub_r=32):
    """Fused batch_act: greedy action indices [B] (argmax computed inside the kernel)."""
    wb, dims = pack_params(params)
    _, idx = _fused_mlp(wb, x, dims=dims, sub_r=_pick_sub_r(x.shape[0], max_sub_r))
    return idx


def init_params(key, n_actions):
    """Deterministic init mirroring nn.Linear's U(-1/sqrt(fan_in), 1/sqrt(fan_in))."""
    dims = list(_HIDDEN_DIMS) + [n_actions]
    params = []
    for i in range(len(dims) - 1):
        fan_in, fan_out = dims[i], dims[i + 1]
        key, kw, kb = jax.random.split(key, 3)
        bound = 1.0 / jnp.sqrt(fan_in)
        # Stored directly as [in, out] (transpose of PyTorch's [out, in]).
        W = jax.random.uniform(kw, (fan_in, fan_out), jnp.float32, -bound, bound)
        b = jax.random.uniform(kb, (1, fan_out), jnp.float32, -bound, bound)
        params.append((W, b))
    return params


def _reference_forward(x, params):
    """Pure-JAX reference (same math) for a sanity check."""
    h = x
    for i, (W, b) in enumerate(params):
        h = h @ W + b
        if i < len(params) - 1:
            h = jnp.maximum(h, 0.0)
    return h


if __name__ == "__main__":
    key = jax.random.PRNGKey(0)
    n_actions = 2          # len(legal_actions), e.g. CartPole-style

    k_params, k_x1, k_x2, k_x3 = jax.random.split(key, 4)
    params = init_params(k_params, n_actions)

    # Small "act"-sized batch (pads to a single (8,128) slab tile).
    x_small = jax.random.normal(k_x1, (8, 4), jnp.float32)
    q_small = jax.block_until_ready(simple_q_network_forward(x_small, params))
    ref_small = _reference_forward(x_small, params)
    assert q_small.shape == (8, n_actions)
    assert jnp.allclose(q_small, ref_small, atol=1e-5, rtol=1e-5), "mismatch (small batch)"

    # Replay-buffer-sized batch (single larger tile).
    x_big = jax.random.normal(k_x2, (300, 4), jnp.float32)
    q_big = jax.block_until_ready(simple_q_network_forward(x_big, params))
    ref_big = _reference_forward(x_big, params)
    assert q_big.shape == (300, n_actions)
    assert jnp.allclose(q_big, ref_big, atol=1e-5, rtol=1e-5), "mismatch (big batch)"

    # Fused greedy-action epilogue (batch_act).
    idx = jax.block_until_ready(simple_q_network_batch_act(x_big, params))
    assert idx.shape == (300,)
    assert jnp.array_equal(idx, jnp.argmax(ref_big, axis=1).astype(idx.dtype)), "argmax mismatch"

    # Multi-tile grid path: force tile_b=1024 so 2500 rows span 3 grid steps.
    x_grid = jax.random.normal(k_x3, (2500, 4), jnp.float32)
    q_grid = jax.block_until_ready(simple_q_network_forward(x_grid, params, max_sub_r=8))
    ref_grid = _reference_forward(x_grid, params)
    assert q_grid.shape == (2500, n_actions)
    assert jnp.allclose(q_grid, ref_grid, atol=1e-5, rtol=1e-5), "mismatch (multi-tile grid)"

    print("KERNEL_OK")
</pallas_src>

<mosaic_0001>
module attributes {stable_mosaic.version = 11 : i64} {
  func.func @kernel(%arg0: i32, %arg1: memref<56xf32, #tpu.memory_space<smem>>, %arg2: memref<4x8x128xf32, #tpu.memory_space<vmem>>, %arg3: memref<2x8x128xf32, #tpu.memory_space<vmem>>, %arg4: memref<8x128xi32, #tpu.memory_space<vmem>>) attributes {dimension_semantics = [#tpu.dimension_semantics<parallel>], iteration_bounds = array<i64: 1>, scalar_prefetch = 0 : i64, scratch_operands = 0 : i64, tpu.core_type = #tpu.core_type<tc>, window_params = [{transform_indices = @transform_0, window_bounds = array<i64: 56>}, {transform_indices = @transform_1, window_bounds = array<i64: 4, 8, 128>}, {transform_indices = @transform_2, window_bounds = array<i64: 2, 8, 128>}, {transform_indices = @transform_3, window_bounds = array<i64: 8, 128>}]} {
    %c0 = arith.constant 0 : index
    %c0_0 = arith.constant 0 : index
    %c0_1 = arith.constant 0 : index
    %0 = vector.load %arg2[%c0, %c0_0, %c0_1] : memref<4x8x128xf32, #tpu.memory_space<vmem>>, vector<1x8x128xf32>
    %1 = vector.shape_cast %0 : vector<1x8x128xf32> to vector<8x128xf32>
    %c1 = arith.constant 1 : index
    %c0_2 = arith.constant 0 : index
    %c0_3 = arith.constant 0 : index
    %2 = vector.load %arg2[%c1, %c0_2, %c0_3] : memref<4x8x128xf32, #tpu.memory_space<vmem>>, vector<1x8x128xf32>
    %3 = vector.shape_cast %2 : vector<1x8x128xf32> to vector<8x128xf32>
    %c2 = arith.constant 2 : index
    %c0_4 = arith.constant 0 : index
    %c0_5 = arith.constant 0 : index
    %4 = vector.load %arg2[%c2, %c0_4, %c0_5] : memref<4x8x128xf32, #tpu.memory_space<vmem>>, vector<1x8x128xf32>
    %5 = vector.shape_cast %4 : vector<1x8x128xf32> to vector<8x128xf32>
    %c3 = arith.constant 3 : index
    %c0_6 = arith.constant 0 : index
    %c0_7 = arith.constant 0 : index
    %6 = vector.load %arg2[%c3, %c0_6, %c0_7] : memref<4x8x128xf32, #tpu.memory_space<vmem>>, vector<1x8x128xf32>
    %7 = vector.shape_cast %6 : vector<1x8x128xf32> to vector<8x128xf32>
    %c0_8 = arith.constant 0 : index
    %8 = memref.load %arg1[%c0_8] : memref<56xf32, #tpu.memory_space<smem>>
    %9 = vector.broadcast %8 : f32 to vector<8x128xf32>
    %10 = arith.mulf %9, %1 : vector<8x128xf32>
    %c4 = arith.constant 4 : index
    %11 = memref.load %arg1[%c4] : memref<56xf32, #tpu.memory_space<smem>>
    %12 = vector.broadcast %11 : f32 to vector<8x128xf32>
    %13 = arith.mulf %12, %3 : vector<8x128xf32>
    %14 = arith.addf %10, %13 : vector<8x128xf32>
    %c8 = arith.constant 8 : index
    %15 = memref.load %arg1[%c8] : memref<56xf32, #tpu.memory_space<smem>>
    %16 = vector.broadcast %15 : f32 to vector<8x128xf32>
    %17 = arith.mulf %16, %5 : vector<8x128xf32>
    %18 = arith.addf %14, %17 : vector<8x128xf32>
    %c12 = arith.constant 12 : index
    %19 = memref.load %arg1[%c12] : memref<56xf32, #tpu.memory_space<smem>>
    %20 = vector.broadcast %19 : f32 to vector<8x128xf32>
    %21 = arith.mulf %20, %7 : vector<8x128xf32>
    %22 = arith.addf %18, %21 : vector<8x128xf32>
    %c16 = arith.constant 16 : index
    %23 = memref.load %arg1[%c16] : memref<56xf32, #tpu.memory_space<smem>>
    %24 = vector.broadcast %23 : f32 to vector<8x128xf32>
    %25 = arith.addf %22, %24 : vector<8x128xf32>
    %cst = arith.constant 0.000000e+00 : f32
    %26 = vector.broadcast %cst : f32 to vector<8x128xf32>
    %27 = arith.maximumf %25, %26 : vector<8x128xf32>
    %c1_9 = arith.constant 1 : index
    %28 = memref.load %arg1[%c1_9] : memref<56xf32, #tpu.memory_space<smem>>
    %29 = vector.broadcast %28 : f32 to vector<8x128xf32>
    %30 = arith.mulf %29, %1 : vector<8x128xf32>
    %c5 = arith.constant 5 : index
    %31 = memref.load %arg1[%c5] : memref<56xf32, #tpu.memory_space<smem>>
    %32 = vector.broadcast %31 : f32 to vector<8x128xf32>
    %33 = arith.mulf %32, %3 : vector<8x128xf32>
    %34 = arith.addf %30, %33 : vector<8x128xf32>
    %c9 = arith.constant 9 : index
    %35 = memref.load %arg1[%c9] : memref<56xf32, #tpu.memory_space<smem>>
    %36 = vector.broadcast %35 : f32 to vector<8x128xf32>
    %37 = arith.mulf %36, %5 : vector<8x128xf32>
    %38 = arith.addf %34, %37 : vector<8x128xf32>
    %c13 = arith.constant 13 : index
    %39 = memref.load %arg1[%c13] : memref<56xf32, #tpu.memory_space<smem>>
    %40 = vector.broadcast %39 : f32 to vector<8x128xf32>
    %41 = arith.mulf %40, %7 : vector<8x128xf32>
    %42 = arith.addf %38, %41 : vector<8x128xf32>
    %c17 = arith.constant 17 : index
    %43 = memref.load %arg1[%c17] : memref<56xf32, #tpu.memory_space<smem>>
    %44 = vector.broadcast %43 : f32 to vector<8x128xf32>
    %45 = arith.addf %42, %44 : vector<8x128xf32>
    %cst_10 = arith.constant 0.000000e+00 : f32
    %46 = vector.broadcast %cst_10 : f32 to vector<8x128xf32>
    %47 = arith.maximumf %45, %46 : vector<8x128xf32>
    %c2_11 = arith.constant 2 : index
    %48 = memref.load %arg1[%c2_11] : memref<56xf32, #tpu.memory_space<smem>>
    %49 = vector.broadcast %48 : f32 to vector<8x128xf32>
    %50 = arith.mulf %49, %1 : vector<8x128xf32>
    %c6 = arith.constant 6 : index
    %51 = memref.load %arg1[%c6] : memref<56xf32, #tpu.memory_space<smem>>
    %52 = vector.broadcast %51 : f32 to vector<8x128xf32>
    %53 = arith.mulf %52, %3 : vector<8x128xf32>
    %54 = arith.addf %50, %53 : vector<8x128xf32>
    %c10 = arith.constant 10 : index
    %55 = memref.load %arg1[%c10] : memref<56xf32, #tpu.memory_space<smem>>
    %56 = vector.broadcast %55 : f32 to vector<8x128xf32>
    %57 = arith.mulf %56, %5 : vector<8x128xf32>
    %58 = arith.addf %54, %57 : vector<8x128xf32>
    %c14 = arith.constant 14 : index
    %59 = memref.load %arg1[%c14] : memref<56xf32, #tpu.memory_space<smem>>
    %60 = vector.broadcast %59 : f32 to vector<8x128xf32>
    %61 = arith.mulf %60, %7 : vector<8x128xf32>
    %62 = arith.addf %58, %61 : vector<8x128xf32>
    %c18 = arith.constant 18 : index
    %63 = memref.load %arg1[%c18] : memref<56xf32, #tpu.memory_space<smem>>
    %64 = vector.broadcast %63 : f32 to vector<8x128xf32>
    %65 = arith.addf %62, %64 : vector<8x128xf32>
    %cst_12 = arith.constant 0.000000e+00 : f32
    %66 = vector.broadcast %cst_12 : f32 to vector<8x128xf32>
    %67 = arith.maximumf %65, %66 : vector<8x128xf32>
    %c3_13 = arith.constant 3 : index
    %68 = memref.load %arg1[%c3_13] : memref<56xf32, #tpu.memory_space<smem>>
    %69 = vector.broadcast %68 : f32 to vector<8x128xf32>
    %70 = arith.mulf %69, %1 : vector<8x128xf32>
    %c7 = arith.constant 7 : index
    %71 = memref.load %arg1[%c7] : memref<56xf32, #tpu.memory_space<smem>>
    %72 = vector.broadcast %71 : f32 to vector<8x128xf32>
    %73 = arith.mulf %72, %3 : vector<8x128xf32>
    %74 = arith.addf %70, %73 : vector<8x128xf32>
    %c11 = arith.constant 11 : index
    %75 = memref.load %arg1[%c11] : memref<56xf32, #tpu.memory_space<smem>>
    %76 = vector.broadcast %75 : f32 to vector<8x128xf32>
    %77 = arith.mulf %76, %5 : vector<8x128xf32>
    %78 = arith.addf %74, %77 : vector<8x128xf32>
    %c15 = arith.constant 15 : index
    %79 = memref.load %arg1[%c15] : memref<56xf32, #tpu.memory_space<smem>>
    %80 = vector.broadcast %79 : f32 to vector<8x128xf32>
    %81 = arith.mulf %80, %7 : vector<8x128xf32>
    %82 = arith.addf %78, %81 : vector<8x128xf32>
    %c19 = arith.constant 19 : index
    %83 = memref.load %arg1[%c19] : memref<56xf32, #tpu.memory_space<smem>>
    %84 = vector.broadcast %83 : f32 to vector<8x128xf32>
    %85 = arith.addf %82, %84 : vector<8x128xf32>
    %cst_14 = arith.constant 0.000000e+00 : f32
    %86 = vector.broadcast %cst_14 : f32 to vector<8x128xf32>
    %87 = arith.maximumf %85, %86 : vector<8x128xf32>
    %c20 = arith.constant 20 : index
    %88 = memref.load %arg1[%c20] : memref<56xf32, #tpu.memory_space<smem>>
    %89 = vector.broadcast %88 : f32 to vector<8x128xf32>
    %90 = arith.mulf %89, %27 : vector<8x128xf32>
    %c24 = arith.constant 24 : index
    %91 = memref.load %arg1[%c24] : memref<56xf32, #tpu.memory_space<smem>>
    %92 = vector.broadcast %91 : f32 to vector<8x128xf32>
    %93 = arith.mulf %92, %47 : vector<8x128xf32>
    %94 = arith.addf %90, %93 : vector<8x128xf32>
    %c28 = arith.constant 28 : index
    %95 = memref.load %arg1[%c28] : memref<56xf32, #tpu.memory_space<smem>>
    %96 = vector.broadcast %95 : f32 to vector<8x128xf32>
    %97 = arith.mulf %96, %67 : vector<8x128xf32>
    %98 = arith.addf %94, %97 : vector<8x128xf32>
    %c32 = arith.constant 32 : index
    %99 = memref.load %arg1[%c32] : memref<56xf32, #tpu.memory_space<smem>>
    %100 = vector.broadcast %99 : f32 to vector<8x128xf32>
    %101 = arith.mulf %100, %87 : vector<8x128xf32>
    %102 = arith.addf %98, %101 : vector<8x128xf32>
    %c36 = arith.constant 36 : index
    %103 = memref.load %arg1[%c36] : memref<56xf32, #tpu.memory_space<smem>>
    %104 = vector.broadcast %103 : f32 to vector<8x128xf32>
    %105 = arith.addf %102, %104 : vector<8x128xf32>
    %cst_15 = arith.constant 0.000000e+00 : f32
    %106 = vector.broadcast %cst_15 : f32 to vector<8x128xf32>
    %107 = arith.maximumf %105, %106 : vector<8x128xf32>
    %c21 = arith.constant 21 : index
    %108 = memref.load %arg1[%c21] : memref<56xf32, #tpu.memory_space<smem>>
    %109 = vector.broadcast %108 : f32 to vector<8x128xf32>
    %110 = arith.mulf %109, %27 : vector<8x128xf32>
    %c25 = arith.constant 25 : index
    %111 = memref.load %arg1[%c25] : memref<56xf32, #tpu.memory_space<smem>>
    %112 = vector.broadcast %111 : f32 to vector<8x128xf32>
    %113 = arith.mulf %112, %47 : vector<8x128xf32>
    %114 = arith.addf %110, %113 : vector<8x128xf32>
    %c29 = arith.constant 29 : index
    %115 = memref.load %arg1[%c29] : memref<56xf32, #tpu.memory_space<smem>>
    %116 = vector.broadcast %115 : f32 to vector<8x128xf32>
    %117 = arith.mulf %116, %67 : vector<8x128xf32>
    %118 = arith.addf %114, %117 : vector<8x128xf32>
    %c33 = arith.constant 33 : index
    %119 = memref.load %arg1[%c33] : memref<56xf32, #tpu.memory_space<smem>>
    %120 = vector.broadcast %119 : f32 to vector<8x128xf32>
    %121 = arith.mulf %120, %87 : vector<8x128xf32>
    %122 = arith.addf %118, %121 : vector<8x128xf32>
    %c37 = arith.constant 37 : index
    %123 = memref.load %arg1[%c37] : memref<56xf32, #tpu.memory_space<smem>>
    %124 = vector.broadcast %123 : f32 to vector<8x128xf32>
    %125 = arith.addf %122, %124 : vector<8x128xf32>
    %cst_16 = arith.constant 0.000000e+00 : f32
    %126 = vector.broadcast %cst_16 : f32 to vector<8x128xf32>
    %127 = arith.maximumf %125, %126 : vector<8x128xf32>
    %c22 = arith.constant 22 : index
    %128 = memref.load %arg1[%c22] : memref<56xf32, #tpu.memory_space<smem>>
    %129 = vector.broadcast %128 : f32 to vector<8x128xf32>
    %130 = arith.mulf %129, %27 : vector<8x128xf32>
    %c26 = arith.constant 26 : index
    %131 = memref.load %arg1[%c26] : memref<56xf32, #tpu.memory_space<smem>>
    %132 = vector.broadcast %131 : f32 to vector<8x128xf32>
    %133 = arith.mulf %132, %47 : vector<8x128xf32>
    %134 = arith.addf %130, %133 : vector<8x128xf32>
    %c30 = arith.constant 30 : index
    %135 = memref.load %arg1[%c30] : memref<56xf32, #tpu.memory_space<smem>>
    %136 = vector.broadcast %135 : f32 to vector<8x128xf32>
    %137 = arith.mulf %136, %67 : vector<8x128xf32>
    %138 = arith.addf %134, %137 : vector<8x128xf32>
    %c34 = arith.constant 34 : index
    %139 = memref.load %arg1[%c34] : memref<56xf32, #tpu.memory_space<smem>>
    %140 = vector.broadcast %139 : f32 to vector<8x128xf32>
    %141 = arith.mulf %140, %87 : vector<8x128xf32>
    %142 = arith.addf %138, %141 : vector<8x128xf32>
    %c38 = arith.constant 38 : index
    %143 = memref.load %arg1[%c38] : memref<56xf32, #tpu.memory_space<smem>>
    %144 = vector.broadcast %143 : f32 to vector<8x128xf32>
    %145 = arith.addf %142, %144 : vector<8x128xf32>
    %cst_17 = arith.constant 0.000000e+00 : f32
    %146 = vector.broadcast %cst_17 : f32 to vector<8x128xf32>
    %147 = arith.maximumf %145, %146 : vector<8x128xf32>
    %c23 = arith.constant 23 : index
    %148 = memref.load %arg1[%c23] : memref<56xf32, #tpu.memory_space<smem>>
    %149 = vector.broadcast %148 : f32 to vector<8x128xf32>
    %150 = arith.mulf %149, %27 : vector<8x128xf32>
    %c27 = arith.constant 27 : index
    %151 = memref.load %arg1[%c27] : memref<56xf32, #tpu.memory_space<smem>>
    %152 = vector.broadcast %151 : f32 to vector<8x128xf32>
    %153 = arith.mulf %152, %47 : vector<8x128xf32>
    %154 = arith.addf %150, %153 : vector<8x128xf32>
    %c31 = arith.constant 31 : index
    %155 = memref.load %arg1[%c31] : memref<56xf32, #tpu.memory_space<smem>>
    %156 = vector.broadcast %155 : f32 to vector<8x128xf32>
    %157 = arith.mulf %156, %67 : vector<8x128xf32>
    %158 = arith.addf %154, %157 : vector<8x128xf32>
    %c35 = arith.constant 35 : index
    %159 = memref.load %arg1[%c35] : memref<56xf32, #tpu.memory_space<smem>>
    %160 = vector.broadcast %159 : f32 to vector<8x128xf32>
    %161 = arith.mulf %160, %87 : vector<8x128xf32>
    %162 = arith.addf %158, %161 : vector<8x128xf32>
    %c39 = arith.constant 39 : index
    %163 = memref.load %arg1[%c39] : memref<56xf32, #tpu.memory_space<smem>>
    %164 = vector.broadcast %163 : f32 to vector<8x128xf32>
    %165 = arith.addf %162, %164 : vector<8x128xf32>
    %cst_18 = arith.constant 0.000000e+00 : f32
    %166 = vector.broadcast %cst_18 : f32 to vector<8x128xf32>
    %167 = arith.maximumf %165, %166 : vector<8x128xf32>
    %c40 = arith.constant 40 : index
    %168 = memref.load %arg1[%c40] : memref<56xf32, #tpu.memory_space<smem>>
    %169 = vector.broadcast %168 : f32 to vector<8x128xf32>
    %170 = arith.mulf %169, %107 : vector<8x128xf32>
    %c42 = arith.constant 42 : index
    %171 = memref.load %arg1[%c42] : memref<56xf32, #tpu.memory_space<smem>>
    %172 = vector.broadcast %171 : f32 to vector<8x128xf32>
    %173 = arith.mulf %172, %127 : vector<8x128xf32>
    %174 = arith.addf %170, %173 : vector<8x128xf32>
    %c44 = arith.constant 44 : index
    %175 = memref.load %arg1[%c44] : memref<56xf32, #tpu.memory_space<smem>>
    %176 = vector.broadcast %175 : f32 to vector<8x128xf32>
    %177 = arith.mulf %176, %147 : vector<8x128xf32>
    %178 = arith.addf %174, %177 : vector<8x128xf32>
    %c46 = arith.constant 46 : index
    %179 = memref.load %arg1[%c46] : memref<56xf32, #tpu.memory_space<smem>>
    %180 = vector.broadcast %179 : f32 to vector<8x128xf32>
    %181 = arith.mulf %180, %167 : vector<8x128xf32>
    %182 = arith.addf %178, %181 : vector<8x128xf32>
    %c48 = arith.constant 48 : index
    %183 = memref.load %arg1[%c48] : memref<56xf32, #tpu.memory_space<smem>>
    %184 = vector.broadcast %183 : f32 to vector<8x128xf32>
    %185 = arith.addf %182, %184 : vector<8x128xf32>
    %cst_19 = arith.constant 0.000000e+00 : f32
    %186 = vector.broadcast %cst_19 : f32 to vector<8x128xf32>
    %187 = arith.maximumf %185, %186 : vector<8x128xf32>
    %c41 = arith.constant 41 : index
    %188 = memref.load %arg1[%c41] : memref<56xf32, #tpu.memory_space<smem>>
    %189 = vector.broadcast %188 : f32 to vector<8x128xf32>
    %190 = arith.mulf %189, %107 : vector<8x128xf32>
    %c43 = arith.constant 43 : index
    %191 = memref.load %arg1[%c43] : memref<56xf32, #tpu.memory_space<smem>>
    %192 = vector.broadcast %191 : f32 to vector<8x128xf32>
    %193 = arith.mulf %192, %127 : vector<8x128xf32>
    %194 = arith.addf %190, %193 : vector<8x128xf32>
    %c45 = arith.constant 45 : index
    %195 = memref.load %arg1[%c45] : memref<56xf32, #tpu.memory_space<smem>>
    %196 = vector.broadcast %195 : f32 to vector<8x128xf32>
    %197 = arith.mulf %196, %147 : vector<8x128xf32>
    %198 = arith.addf %194, %197 : vector<8x128xf32>
    %c47 = arith.constant 47 : index
    %199 = memref.load %arg1[%c47] : memref<56xf32, #tpu.memory_space<smem>>
    %200 = vector.broadcast %199 : f32 to vector<8x128xf32>
    %201 = arith.mulf %200, %167 : vector<8x128xf32>
    %202 = arith.addf %198, %201 : vector<8x128xf32>
    %c49 = arith.constant 49 : index
    %203 = memref.load %arg1[%c49] : memref<56xf32, #tpu.memory_space<smem>>
    %204 = vector.broadcast %203 : f32 to vector<8x128xf32>
    %205 = arith.addf %202, %204 : vector<8x128xf32>
    %cst_20 = arith.constant 0.000000e+00 : f32
    %206 = vector.broadcast %cst_20 : f32 to vector<8x128xf32>
    %207 = arith.maximumf %205, %206 : vector<8x128xf32>
    %c50 = arith.constant 50 : index
    %208 = memref.load %arg1[%c50] : memref<56xf32, #tpu.memory_space<smem>>
    %209 = vector.broadcast %208 : f32 to vector<8x128xf32>
    %210 = arith.mulf %209, %187 : vector<8x128xf32>
    %c52 = arith.constant 52 : index
    %211 = memref.load %arg1[%c52] : memref<56xf32, #tpu.memory_space<smem>>
    %212 = vector.broadcast %211 : f32 to vector<8x128xf32>
    %213 = arith.mulf %212, %207 : vector<8x128xf32>
    %214 = arith.addf %210, %213 : vector<8x128xf32>
    %c54 = arith.constant 54 : index
    %215 = memref.load %arg1[%c54] : memref<56xf32, #tpu.memory_space<smem>>
    %216 = vector.broadcast %215 : f32 to vector<8x128xf32>
    %217 = arith.addf %214, %216 : vector<8x128xf32>
    %c51 = arith.constant 51 : index
    %218 = memref.load %arg1[%c51] : memref<56xf32, #tpu.memory_space<smem>>
    %219 = vector.broadcast %218 : f32 to vector<8x128xf32>
    %220 = arith.mulf %219, %187 : vector<8x128xf32>
    %c53 = arith.constant 53 : index
    %221 = memref.load %arg1[%c53] : memref<56xf32, #tpu.memory_space<smem>>
    %222 = vector.broadcast %221 : f32 to vector<8x128xf32>
    %223 = arith.mulf %222, %207 : vector<8x128xf32>
    %224 = arith.addf %220, %223 : vector<8x128xf32>
    %c55 = arith.constant 55 : index
    %225 = memref.load %arg1[%c55] : memref<56xf32, #tpu.memory_space<smem>>
    %226 = vector.broadcast %225 : f32 to vector<8x128xf32>
    %227 = arith.addf %224, %226 : vector<8x128xf32>
    %c0_21 = arith.constant 0 : index
    %c0_22 = arith.constant 0 : index
    %c0_23 = arith.constant 0 : index
    %228 = vector.load %arg3[%c0_21, %c0_22, %c0_23] : memref<2x8x128xf32, #tpu.memory_space<vmem>>, vector<1x8x128xf32>
    %229 = vector.shape_cast %228 : vector<1x8x128xf32> to vector<8x128xf32>
    %230 = vector.shape_cast %217 : vector<8x128xf32> to vector<1x8x128xf32>
    tpu.vector_store %arg3[%c0_21, %c0_22, %c0_23], %230 {strides = array<i32>} : memref<2x8x128xf32, #tpu.memory_space<vmem>>, vector<1x8x128xf32>,
    %c1_24 = arith.constant 1 : index
    %c0_25 = arith.constant 0 : index
    %c0_26 = arith.constant 0 : index
    %231 = vector.load %arg3[%c1_24, %c0_25, %c0_26] : memref<2x8x128xf32, #tpu.memory_space<vmem>>, vector<1x8x128xf32>
    %232 = vector.shape_cast %231 : vector<1x8x128xf32> to vector<8x128xf32>
    %233 = vector.shape_cast %227 : vector<8x128xf32> to vector<1x8x128xf32>
    tpu.vector_store %arg3[%c1_24, %c0_25, %c0_26], %233 {strides = array<i32>} : memref<2x8x128xf32, #tpu.memory_space<vmem>>, vector<1x8x128xf32>,
    %c0_i32 = arith.constant 0 : i32
    %234 = vector.broadcast %c0_i32 : i32 to vector<8x128xi32>
    %235 = arith.cmpf ogt, %227, %217 : vector<8x128xf32>
    %c1_i32 = arith.constant 1 : i32
    %236 = vector.broadcast %c1_i32 : i32 to vector<8x128xi32>
    %237 = arith.select %235, %236, %234 : vector<8x128xi1>, vector<8x128xi32>
    %c0_27 = arith.constant 0 : index
    %c0_28 = arith.constant 0 : index
    %238 = vector.load %arg4[%c0_27, %c0_28] : memref<8x128xi32, #tpu.memory_space<vmem>>, vector<8x128xi32>
    tpu.vector_store %arg4[%c0_27, %c0_28], %237 {strides = array<i32>} : memref<8x128xi32, #tpu.memory_space<vmem>>, vector<8x128xi32>,
    return
  }
  func.func @transform_0(%arg0: i32) -> i32 {
    %c0_i32 = arith.constant 0 : i32
    %c0_i32_0 = arith.constant 0 : i32
    return %c0_i32 : i32
  }
  func.func @transform_1(%arg0: i32) -> (i32, i32, i32) {
    %c0_i32 = arith.constant 0 : i32
    %c0_i32_0 = arith.constant 0 : i32
    %c0_i32_1 = arith.constant 0 : i32
    return %c0_i32, %arg0, %c0_i32_0 : i32, i32, i32
  }
  func.func @transform_2(%arg0: i32) -> (i32, i32, i32) {
    %c0_i32 = arith.constant 0 : i32
    %c0_i32_0 = arith.constant 0 : i32
    %c0_i32_1 = arith.constant 0 : i32
    return %c0_i32, %arg0, %c0_i32_0 : i32, i32, i32
  }
  func.func @transform_3(%arg0: i32) -> (i32, i32) {
    %c0_i32 = arith.constant 0 : i32
    %c0_i32_0 = arith.constant 0 : i32
    return %arg0, %c0_i32 : i32, i32
  }
}

</mosaic_0001>

<bundles_post_ra>
// kernel: _fused_mlp.1
= control target key start
LH: loop header
LB: loop body
LE: loop exit
PB: predicated region body
PF: predicated region fallthrough
CT: control target
= control target key end

     0   :  { %9 = vsyncpa [#allocation3], 0  ;;  %s535_s0 = inlined_call_operand.vmem [shape: f32[56], index: 0, kind: input, shape index: {}]   ;;  %s536_s1 = inlined_call_operand.vmem [shape: f32[4,8,128], index: 1, kind: input, shape index: {}]   ;;  %s537_s2 = inlined_call_operand.vmem [shape: f32[2,8,128], index: 2, kind: output, shape index: {0}]   ;;  %s538_s3 = inlined_call_operand.vmem [shape: s32[8,128], index: 3, kind: output, shape index: {1}]  }
   0x1   :  { %s16_s14 = sshll.u32 %s535_s0, 4  ;;  %s17_s14 = int_to_ptr.vmem [resolvable:$true] %s16_s14 }
   0x2   :  { %s319_s15 = scalar_lea.vmem %s17_s14, 16  ;;  %p324_p1 = scmp.lt.s32.totalorder %s17_s14, %s17_s14 }
   0x3   :  { %p320_p0 = scmp.ne.s32.totalorder %s17_s14, %s319_s15  ;;  %p325_p2 = scmp.lt.s32.totalorder %s319_s15, %s319_s15 }
   0x5   :  { %p326_p3 = por %p325_p2, %p324_p1 }
   0x7   :  { %p327_p4 = pnand %p326_p3, %p320_p0 }
   0x9   :  { %330 = shalt.err (!%p327_p4)
}
   0xa   :  { %s333_s16 = smov [#allocation2]  }
   0xb   :  { %19 = dma.vmem_to_smem %s17_s14, 16, %s333_s16, [#allocation3]  }
   0xc   :  { %331 = dma.done.wait [#allocation3], 16  }
   0xd   :  { %332 = vsyncadd [#allocation3], 4294967280 }
   0xe   :  { %25 = sfence }
   0xf   :  { %s33_s17 = sld [smem:[#allocation2]]  ;;  %s261_s18 = sld [smem:[#allocation2 + $0x4]]  ;;  %v363_v0 = vld [vmem:[%s536_s1] sm:$0xff]  ;;  %v372_v1 = vld [vmem:[%s536_s1 + $0x8] sm:$0xff]  ;;  %v377_v2 = vld [vmem:[%s536_s1 + $0x10] sm:$0xff] }
  0x10   :  { %s262_s19 = sld [smem:[#allocation2 + $0x8]]  ;;  %s263_s20 = sld [smem:[#allocation2 + $0xc]]  ;;  %v386_v3 = vld [vmem:[%s536_s1 + $0x18] sm:$0xff] }
  0x11   :  { %s358_s21 = sld [smem:[#allocation2 + $0x10]]  ;;  %s265_s0 = sld [smem:[#allocation2 + $0x1]] }
  0x12   :  { %s266_s22 = sld [smem:[#allocation2 + $0x5]]  ;;  %s365_s25 = sld [smem:[#allocation2 + $0x9]] }
  0x13   :  { %s367_s26 = sld [smem:[#allocation2 + $0xd]]  ;;  %s379_s4 = sld [smem:[#allocation2 + $0x11]] }
  0x14   :  { %s381_s5 = sld [smem:[#allocation2 + $0x2]]  ;;  %s388_s8 = sld [smem:[#allocation2 + $0x6]] }
  0x15   :  { %v34_v4 = vstv %s33_s17  ;;  %s390_s9 = sld [smem:[#allocation2 + $0xa]]  ;;  %v37_v6 = vstv %s261_s18  ;;  %s393_s10 = sld [smem:[#allocation2 + $0xe]] }
  0x16   :  { %v35_v5 = vmul.f32 %v34_v4, %v363_v0  ;;  %v41_v7 = vstv %s262_s19  ;;  %s395_s11 = sld [smem:[#allocation2 + $0x12]]  ;;  %v38_v8 = vmul.f32 %v372_v1, %v37_v6  ;;  %v45_v10 = vstv %s263_s20  ;;  %s399_s1 = sld [smem:[#allocation2 + $0x3]] }
  0x17   :  { %v42_v9 = vmul.f32 %v377_v2, %v41_v7  ;;  %s401_s12 = sld [smem:[#allocation2 + $0x7]]  ;;  %v46_v11 = vmul.f32 %v386_v3, %v45_v10  ;;  %v53_v12 = vstv %s265_s0  ;;  %s404_s13 = sld [smem:[#allocation2 + $0xb]]  ;;  %v49_v18 = vstv %s358_s21 }
  0x18   :  { %v56_v13 = vstv %s266_s22  ;;  %s406_s14 = sld [smem:[#allocation2 + $0xf]]  ;;  %v39_v14 = vadd.f32 %v38_v8, %v35_v5  ;;  %v54_v15 = vmul.f32 %v53_v12, %v363_v0  ;;  %v60_v17 = vstv %s365_s25  ;;  %s411_s15 = sld [smem:[#allocation2 + $0x13]] }
  0x19   :  { %v57_v16 = vmul.f32 %v372_v1, %v56_v13  ;;  %v61_v19 = vmul.f32 %v377_v2, %v60_v17  ;;  %v64_v20 = vstv %s367_s26  ;;  %s417_s16 = sld [smem:[#allocation2 + $0x14]]  ;;  %s419_s17 = sld [smem:[#allocation2 + $0x18]]  ;;  %v68_v26 = vstv %s379_s4 }
  0x1a   :  { %v72_v21 = vstv %s381_s5  ;;  %v43_v22 = vadd.f32 %v42_v9, %v39_v14  ;;  %v65_v24 = vmul.f32 %v386_v3, %v64_v20  ;;  %s423_s18 = sld [smem:[#allocation2 + $0x1c]]  ;;  %s425_s19 = sld [smem:[#allocation2 + $0x20]]  ;;  %v75_v27 = vstv %s388_s8 }
  0x1b   :  { %v58_v23 = vadd.f32 %v57_v16, %v54_v15  ;;  %v73_v25 = vmul.f32 %v72_v21, %v363_v0  ;;  %v79_v28 = vstv %s390_s9  ;;  %v83_v29 = vstv %s393_s10  ;;  %s431_s20 = sld [smem:[#allocation2 + $0x15]]  ;;  %s433_s21 = sld [smem:[#allocation2 + $0x19]] }
  0x1c   :  { %v47_v30 = vadd.f32 %v46_v11, %v43_v22  ;;  %v76_v32 = vmul.f32 %v372_v1, %v75_v27  ;;  %v80_v33 = vmul.f32 %v377_v2, %v79_v28  ;;  %s437_s0 = sld [smem:[#allocation2 + $0x24]]  ;;  %v84_v34 = vmul.f32 %v386_v3, %v83_v29  ;;  %s443_s22 = sld [smem:[#allocation2 + $0x1d]] }
  0x1d   :  { %v62_v31 = vadd.f32 %v61_v19, %v58_v23  ;;  %v91_v35 = vstv %s399_s1  ;;  %v94_v36 = vstv %s401_s12  ;;  %v98_v37 = vstv %s404_s13  ;;  %s445_s23 = sld [smem:[#allocation2 + $0x21]]  ;;  %s448_s24 = sld [smem:[#allocation2 + $0x16]] }
  0x1e   :  { %v50_v38 = vadd.f32 %v49_v18, %v47_v30  ;;  %v77_v40 = vadd.f32 %v76_v32, %v73_v25  ;;  %v92_v41 = vmul.f32 %v91_v35, %v363_v0  ;;  %v87_v42 = vstv %s395_s11  ;;  %s454_s25 = sld [smem:[#allocation2 + $0x1a]]  ;;  %s456_s26 = sld [smem:[#allocation2 + $0x1e]] }
  0x1f   :  { %v66_v39 = vadd.f32 %v65_v24, %v62_v31  ;;  %v95_v43 = vmul.f32 %v372_v1, %v94_v36  ;;  %v99_v44 = vmul.f32 %v377_v2, %v98_v37  ;;  %v102_v45 = vstv %s406_s14  ;;  %s459_s27 = sld [smem:[#allocation2 + $0x25]]  ;;  %s464_s28 = sld [smem:[#allocation2 + $0x22]] }
  0x20   :  { %v51_v46 = vmax.f32 %v50_v38, 0.0  ;;  %v81_v48 = vadd.f32 %v80_v33, %v77_v40  ;;  %v106_v49 = vstv %s411_s15  ;;  %v103_v51 = vmul.f32 %v386_v3, %v102_v45  ;;  %s466_s29 = sld [smem:[#allocation2 + $0x17]]  ;;  %s472_s30 = sld [smem:[#allocation2 + $0x1b]] }
  0x21   :  { %v69_v47 = vadd.f32 %v68_v26, %v66_v39  ;;  %v96_v50 = vadd.f32 %v95_v43, %v92_v41  ;;  %v110_v52 = vstv %s417_s16  ;;  %v113_v53 = vstv %s419_s17  ;;  %s474_s4 = sld [smem:[#allocation2 + $0x1f]]  ;;  %s476_s5 = sld [smem:[#allocation2 + $0x23]] }
  0x22   :  { %v85_v55 = vadd.f32 %v84_v34, %v81_v48  ;;  %v111_v56 = vmul.f32 %v110_v52, %v51_v46  ;;  %v117_v57 = vstv %s423_s18  ;;  %v121_v59 = vstv %s425_s19  ;;  %s481_s6 = sld [smem:[#allocation2 + $0x26]]  ;;  %s486_s7 = sld [smem:[#allocation2 + $0x27]] }
  0x23   :  { %v70_v54 = vmax.f32 %v69_v47, 0.0  ;;  %v100_v58 = vadd.f32 %v99_v44, %v96_v50  ;;  %v129_v60 = vstv %s431_s20  ;;  %v132_v61 = vstv %s433_s21  ;;  %s488_s8 = sld [smem:[#allocation2 + $0x28]]  ;;  %s490_s9 = sld [smem:[#allocation2 + $0x2a]] }
  0x24   :  { %v88_v62 = vadd.f32 %v87_v42, %v85_v55  ;;  %v130_v0 = vmul.f32 %v129_v60, %v51_v46  ;;  %v125_v3 = vstv %s437_s0  ;;  %v136_v4 = vstv %s443_s22  ;;  %s492_s10 = sld [smem:[#allocation2 + $0x2c]]  ;;  %s497_s11 = sld [smem:[#allocation2 + $0x29]] }
  0x25   :  { %v114_v63 = vmul.f32 %v113_v53, %v70_v54  ;;  %v133_v1 = vmul.f32 %v132_v61, %v70_v54  ;;  %v104_v2 = vadd.f32 %v103_v51, %v100_v58  ;;  %v140_v5 = vstv %s445_s23  ;;  %s499_s1 = sld [smem:[#allocation2 + $0x2b]]  ;;  %s501_s12 = sld [smem:[#allocation2 + $0x2d]] }
  0x26   :  { %v89_v6 = vmax.f32 %v88_v62, 0.0  ;;  %v148_v9 = vstv %s448_s24  ;;  %v151_v12 = vstv %s454_s25  ;;  %v155_v13 = vstv %s456_s26  ;;  %s507_s13 = sld [smem:[#allocation2 + $0x2e]]  ;;  %s509_s14 = sld [smem:[#allocation2 + $0x2f]] }
  0x27   :  { %v115_v7 = vadd.f32 %v114_v63, %v111_v56  ;;  %v134_v8 = vadd.f32 %v133_v1, %v130_v0  ;;  %v107_v10 = vadd.f32 %v106_v49, %v104_v2  ;;  %v149_v11 = vmul.f32 %v148_v9, %v51_v46  ;;  %s515_s15 = sld [smem:[#allocation2 + $0x30]]  ;;  %s519_s16 = sld [smem:[#allocation2 + $0x31]] }
  0x28   :  { %v118_v14 = vmul.f32 %v117_v57, %v89_v6  ;;  %v137_v15 = vmul.f32 %v136_v4, %v89_v6  ;;  %v152_v16 = vmul.f32 %v151_v12, %v70_v54  ;;  %v156_v17 = vmul.f32 %v155_v13, %v89_v6  ;;  %s310_s17 = sld [smem:[#allocation2 + $0x32]]  ;;  %s311_s18 = sld [smem:[#allocation2 + $0x34]] }
  0x29   :  { %v108_v18 = vmax.f32 %v107_v10, 0.0  ;;  %v144_v19 = vstv %s459_s27  ;;  %v159_v20 = vstv %s464_s28  ;;  %v167_v21 = vstv %s466_s29  ;;  %s313_s19 = sld [smem:[#allocation2 + $0x33]]  ;;  %s314_s20 = sld [smem:[#allocation2 + $0x35]] }
  0x2a   :  { %v119_v22 = vadd.f32 %v118_v14, %v115_v7  ;;  %v138_v23 = vadd.f32 %v137_v15, %v134_v8  ;;  %v153_v24 = vadd.f32 %v152_v16, %v149_v11  ;;  %v168_v25 = vmul.f32 %v167_v21, %v51_v46  ;;  %s312_s21 = sld [smem:[#allocation2 + $0x36]]  ;;  %s315_s0 = sld [smem:[#allocation2 + $0x37]] }
  0x2b   :  { %v122_v26 = vmul.f32 %v121_v59, %v108_v18  ;;  %v141_v27 = vmul.f32 %v140_v5, %v108_v18  ;;  %v160_v28 = vmul.f32 %v159_v20, %v108_v18  ;;  %v170_v29 = vstv %s472_s30 }
  0x2c   :  { %v157_v30 = vadd.f32 %v156_v17, %v153_v24  ;;  %v171_v31 = vmul.f32 %v170_v29, %v70_v54  ;;  %v174_v32 = vstv %s474_s4  ;;  %v178_v33 = vstv %s476_s5 }
  0x2d   :  { %v123_v34 = vadd.f32 %v122_v26, %v119_v22  ;;  %v142_v35 = vadd.f32 %v141_v27, %v138_v23  ;;  %v163_v36 = vstv %s481_s6  ;;  %v175_v37 = vmul.f32 %v174_v32, %v89_v6 }
  0x2e   :  { %v161_v38 = vadd.f32 %v160_v28, %v157_v30  ;;  %v172_v39 = vadd.f32 %v171_v31, %v168_v25  ;;  %v179_v40 = vmul.f32 %v178_v33, %v108_v18  ;;  %v182_v43 = vstv %s486_s7 }
  0x2f   :  { %v126_v41 = vadd.f32 %v125_v3, %v123_v34  ;;  %v145_v42 = vadd.f32 %v144_v19, %v142_v35  ;;  %v186_v44 = vstv %s488_s8  ;;  %v189_v47 = vstv %s490_s9 }
  0x30   :  { %v164_v45 = vadd.f32 %v163_v36, %v161_v38  ;;  %v176_v46 = vadd.f32 %v175_v37, %v172_v39  ;;  %v193_v48 = vstv %s492_s10  ;;  %v205_v51 = vstv %s497_s11 }
  0x31   :  { %v127_v49 = vmax.f32 %v126_v41, 0.0  ;;  %v146_v50 = vmax.f32 %v145_v42, 0.0  ;;  %v208_v52 = vstv %s499_s1  ;;  %v212_v55 = vstv %s501_s12 }
  0x32   :  { %v165_v53 = vmax.f32 %v164_v45, 0.0  ;;  %v180_v54 = vadd.f32 %v179_v40, %v176_v46  ;;  %v197_v0 = vstv %s507_s13  ;;  %v216_v2 = vstv %s509_s14 }
  0x33   :  { %v187_v56 = vmul.f32 %v186_v44, %v127_v49  ;;  %v190_v57 = vmul.f32 %v189_v47, %v146_v50  ;;  %v206_v58 = vmul.f32 %v205_v51, %v127_v49  ;;  %v209_v59 = vmul.f32 %v208_v52, %v146_v50 }
  0x34   :  { %v183_v60 = vadd.f32 %v182_v43, %v180_v54  ;;  %v194_v61 = vmul.f32 %v193_v48, %v165_v53  ;;  %v213_v62 = vmul.f32 %v212_v55, %v165_v53  ;;  %v201_v8 = vstv %s515_s15 }
  0x35   :  { %v191_v63 = vadd.f32 %v190_v57, %v187_v56  ;;  %v210_v1 = vadd.f32 %v209_v59, %v206_v58  ;;  %v220_v9 = vstv %s519_s16  ;;  %v224_v14 = vstv %s310_s17 }
  0x36   :  { %v184_v3 = vmax.f32 %v183_v60, 0.0  ;;  %v227_v15 = vstv %s311_s18  ;;  %v234_v16 = vstv %s313_s19  ;;  %v237_v17 = vstv %s314_s20 }
  0x37   :  { %v195_v4 = vadd.f32 %v194_v61, %v191_v63  ;;  %v214_v5 = vadd.f32 %v213_v62, %v210_v1  ;;  %v231_v24 = vstv %s312_s21  ;;  %v241_v25 = vstv %s315_s0 }
  0x38   :  { %v198_v6 = vmul.f32 %v197_v0, %v184_v3  ;;  %v217_v7 = vmul.f32 %v216_v2, %v184_v3  ;;  %v334_v30 = vmov 0  }
  0x3a   :  { %v199_v10 = vadd.f32 %v198_v6, %v195_v4  ;;  %v218_v11 = vadd.f32 %v217_v7, %v214_v5 }
  0x3c   :  { %v202_v12 = vadd.f32 %v201_v8, %v199_v10  ;;  %v221_v13 = vadd.f32 %v220_v9, %v218_v11 }
  0x3e   :  { %v203_v18 = vmax.f32 %v202_v12, 0.0  ;;  %v222_v19 = vmax.f32 %v221_v13, 0.0 }
  0x40   :  { %v225_v20 = vmul.f32 %v224_v14, %v203_v18  ;;  %v228_v21 = vmul.f32 %v227_v15, %v222_v19  ;;  %v235_v22 = vmul.f32 %v234_v16, %v203_v18  ;;  %v238_v23 = vmul.f32 %v237_v17, %v222_v19 }
  0x42   :  { %v229_v26 = vadd.f32 %v228_v21, %v225_v20  ;;  %v239_v27 = vadd.f32 %v238_v23, %v235_v22 }
  0x44   :  { %v232_v28 = vadd.f32 %v231_v24, %v229_v26  ;;  %v242_v29 = vadd.f32 %v241_v25, %v239_v27 }
  0x46   :  { %243 = vst [vmem:[%s537_s2] sm:$0xff] %v232_v28  ;;  %316 = vst [vmem:[%s537_s2 + $0x8] sm:$0xff] %v242_v29  ;;  %vm246_vm0 = vcmp.gt.f32.partialorder %v242_v29, %v232_v28 }
  0x47   :  { %v247_v31 = vsel %vm246_vm0, 1, %v334_v30 }
  0x48   :  { %248 = vst [vmem:[%s538_s3] sm:$0xff] %v247_v31 }
  0x49   :  { %257 = vsyncpa [#allocation3], 1 }

</bundles_post_ra>
